<compile_context>
chip_gen: v6e
topology: v6e:2x2x1
jax: 0.10.0
libtpu: 0.0.40
codegen_flags: <defaults>
</compile_context>

<pallas_src>
import jax
import jax.numpy as jnp
from jax.experimental import pallas as pl
from jax.experimental.pallas import tpu as pltpu


def _round_up(n, m):
    return ((n + m - 1) // m) * m


def _pairwise_kernel(x_ref, o_ref):
    # x_ref: (TB, F, D) VMEM tile; o_ref: (TB, 1)
    TB, F, D = x_ref.shape
    s = jnp.zeros((TB, D), jnp.float32)   # running sum over fields
    q = jnp.zeros((TB, D), jnp.float32)   # running sum of squares over fields
    # F is static, so this unrolls into plain VPU adds/FMAs and keeps live
    # state at ~2*(TB, D) f32 instead of two (TB, F, D) f32 temporaries.
    for f in range(F):
        xf = x_ref[:, f, :].astype(jnp.float32)
        s = s + xf
        q = q + xf * xf
    y = 0.5 * (s * s - q)                                               # (TB, D)
    o_ref[...] = jnp.sum(y, axis=1, keepdims=True).astype(o_ref.dtype)  # (TB, 1)


def _pick_batch_tile(B, F, D, itemsize, target_block_bytes=4 << 20):
    """Largest multiple-of-8 divisor of B whose VMEM-padded block <= target."""
    sub_mult = 8 * max(1, 4 // itemsize)  # sublane packing for narrow dtypes
    row_bytes = _round_up(F, sub_mult) * _round_up(D, 128) * itemsize
    tile = int(min(B, max(8, target_block_bytes // row_bytes)))
    tile = max(8, (tile // 8) * 8)
    while tile >= 8:
        if B % tile == 0:
            return tile
        tile -= 8
    # B < 8 or B has no multiple-of-8 divisor: fall back to a single block.
    return B


def pairwise_interaction(x, *, batch_tile=None, vmem_limit_bytes=None):
    """x: (B, F, D) float array -> (B, 1)."""
    B, F, D = x.shape
    itemsize = jnp.dtype(x.dtype).itemsize

    if batch_tile is None:
        batch_tile = _pick_batch_tile(B, F, D, itemsize)
    assert B % batch_tile == 0, (B, batch_tile)
    # Output block (batch_tile, 1): second-to-last dim must be a multiple of 8
    # or equal the full batch dim.
    assert batch_tile % 8 == 0 or batch_tile == B, (
        "batch_tile must be a multiple of 8 (or equal to B)", batch_tile, B)

    grid = (B // batch_tile,)

    # Explicit VMEM budget (double-buffered input block + accumulators + out).
    sub_mult = 8 * max(1, 4 // itemsize)
    in_block = batch_tile * _round_up(F, sub_mult) * _round_up(D, 128) * itemsize
    acc_bytes = 2 * batch_tile * _round_up(D, 128) * 4
    out_block = _round_up(batch_tile, 8) * 128 * itemsize
    if vmem_limit_bytes is None:
        vmem_limit_bytes = int(max(2 * in_block + acc_bytes + 2 * out_block + (2 << 20),
                                   16 << 20))

    cost = pl.CostEstimate(
        flops=3 * B * F * D + 4 * B * D,
        transcendentals=0,
        bytes_accessed=B * F * D * itemsize + B * itemsize,
    )

    # TODO(synk): if the producer can emit (F, B, D) (or dense (B, F*D)) layout,
    # the per-row (8,128) VMEM padding for small F/D shrinks and batch_tile can
    # grow further; we keep the natural (B, F, D) interface here since a
    # wrapper-side transpose would double HBM traffic for a bandwidth-bound op.
    return pl.pallas_call(
        _pairwise_kernel,
        out_shape=jax.ShapeDtypeStruct((B, 1), x.dtype),
        grid_spec=pltpu.PrefetchScalarGridSpec(
            num_scalar_prefetch=0,
            grid=grid,
            in_specs=[pl.BlockSpec((batch_tile, F, D), lambda i: (i, 0, 0))],
            out_specs=pl.BlockSpec((batch_tile, 1), lambda i: (i, 0)),
        ),
        compiler_params=pltpu.CompilerParams(
            dimension_semantics=("parallel",),
            vmem_limit_bytes=vmem_limit_bytes,
        ),
        cost_estimate=cost,
    )(x)


def pairwise_interaction_ref(x):
    square_of_sum = jnp.sum(x, axis=1) ** 2
    sum_of_square = jnp.sum(x ** 2, axis=1)
    y = 0.5 * (square_of_sum - sum_of_square)
    return jnp.sum(y, axis=1, keepdims=True)


if __name__ == "__main__":
    key = jax.random.PRNGKey(0)

    # Small shape matching the module: (batch, num_fields, embedding_dim).
    B, F, D = 8, 4, 32
    x = jax.random.normal(key, (B, F, D), dtype=jnp.float32)
    out = jax.block_until_ready(pairwise_interaction(x))
    ref = pairwise_interaction_ref(x)
    assert out.shape == (B, 1), out.shape
    assert jnp.allclose(out, ref, atol=1e-4, rtol=1e-4), (out, ref)

    # Exercise the multi-step (pipelined) grid path with an explicit tile.
    B2 = 64
    x2 = jax.random.normal(jax.random.PRNGKey(0), (B2, F, D), dtype=jnp.float32)
    out2 = jax.block_until_ready(pairwise_interaction(x2, batch_tile=16))
    ref2 = pairwise_interaction_ref(x2)
    assert out2.shape == (B2, 1), out2.shape
    assert jnp.allclose(out2, ref2, atol=1e-4, rtol=1e-4), (out2, ref2)

    print("KERNEL_OK")
</pallas_src>

<mosaic_0001>
module attributes {stable_mosaic.version = 11 : i64} {
  func.func @_pairwise_kernel(%arg0: i32, %arg1: memref<8x4x32xf32, #tpu.memory_space<vmem>>, %arg2: memref<8x1xf32, #tpu.memory_space<vmem>>) attributes {dimension_semantics = [#tpu.dimension_semantics<parallel>], iteration_bounds = array<i64: 1>, scalar_prefetch = 0 : i64, scratch_operands = 0 : i64, tpu.core_type = #tpu.core_type<tc>, window_params = [{transform_indices = @transform_0, window_bounds = array<i64: 8, 4, 32>}, {transform_indices = @transform_1, window_bounds = array<i64: 8, 1>}]} {
    %cst = arith.constant 0.000000e+00 : f32
    %0 = vector.broadcast %cst : f32 to vector<8x32xf32>
    %cst_0 = arith.constant 0.000000e+00 : f32
    %1 = vector.broadcast %cst_0 : f32 to vector<8x32xf32>
    %c0 = arith.constant 0 : index
    %c0_1 = arith.constant 0 : index
    %c0_2 = arith.constant 0 : index
    %2 = vector.load %arg1[%c0, %c0_1, %c0_2] : memref<8x4x32xf32, #tpu.memory_space<vmem>>, vector<8x1x32xf32>
    %3 = vector.shape_cast %2 : vector<8x1x32xf32> to vector<8x32xf32>
    %4 = arith.addf %0, %3 : vector<8x32xf32>
    %5 = arith.mulf %3, %3 : vector<8x32xf32>
    %6 = arith.addf %1, %5 : vector<8x32xf32>
    %c0_3 = arith.constant 0 : index
    %c1 = arith.constant 1 : index
    %c0_4 = arith.constant 0 : index
    %7 = vector.load %arg1[%c0_3, %c1, %c0_4] : memref<8x4x32xf32, #tpu.memory_space<vmem>>, vector<8x1x32xf32>
    %8 = vector.shape_cast %7 : vector<8x1x32xf32> to vector<8x32xf32>
    %9 = arith.addf %4, %8 : vector<8x32xf32>
    %10 = arith.mulf %8, %8 : vector<8x32xf32>
    %11 = arith.addf %6, %10 : vector<8x32xf32>
    %c0_5 = arith.constant 0 : index
    %c2 = arith.constant 2 : index
    %c0_6 = arith.constant 0 : index
    %12 = vector.load %arg1[%c0_5, %c2, %c0_6] : memref<8x4x32xf32, #tpu.memory_space<vmem>>, vector<8x1x32xf32>
    %13 = vector.shape_cast %12 : vector<8x1x32xf32> to vector<8x32xf32>
    %14 = arith.addf %9, %13 : vector<8x32xf32>
    %15 = arith.mulf %13, %13 : vector<8x32xf32>
    %16 = arith.addf %11, %15 : vector<8x32xf32>
    %c0_7 = arith.constant 0 : index
    %c3 = arith.constant 3 : index
    %c0_8 = arith.constant 0 : index
    %17 = vector.load %arg1[%c0_7, %c3, %c0_8] : memref<8x4x32xf32, #tpu.memory_space<vmem>>, vector<8x1x32xf32>
    %18 = vector.shape_cast %17 : vector<8x1x32xf32> to vector<8x32xf32>
    %19 = arith.addf %14, %18 : vector<8x32xf32>
    %20 = arith.mulf %18, %18 : vector<8x32xf32>
    %21 = arith.addf %16, %20 : vector<8x32xf32>
    %22 = arith.mulf %19, %19 : vector<8x32xf32>
    %23 = arith.subf %22, %21 : vector<8x32xf32>
    %cst_9 = arith.constant 5.000000e-01 : f32
    %24 = vector.broadcast %cst_9 : f32 to vector<8x32xf32>
    %25 = arith.mulf %24, %23 : vector<8x32xf32>
    %cst_10 = arith.constant dense<0.000000e+00> : vector<8xf32>
    %26 = vector.multi_reduction <add>, %25, %cst_10 [1] : vector<8x32xf32> to vector<8xf32>
    %27 = vector.shape_cast %26 : vector<8xf32> to vector<8x1xf32>
    %c0_11 = arith.constant 0 : index
    %c0_12 = arith.constant 0 : index
    %28 = vector.load %arg2[%c0_11, %c0_12] : memref<8x1xf32, #tpu.memory_space<vmem>>, vector<8x1xf32>
    tpu.vector_store %arg2[%c0_11, %c0_12], %27 {strides = array<i32>} : memref<8x1xf32, #tpu.memory_space<vmem>>, vector<8x1xf32>,
    return
  }
  func.func @transform_0(%arg0: i32) -> (i32, i32, i32) {
    %c0_i32 = arith.constant 0 : i32
    %c0_i32_0 = arith.constant 0 : i32
    %c0_i32_1 = arith.constant 0 : i32
    return %arg0, %c0_i32, %c0_i32_0 : i32, i32, i32
  }
  func.func @transform_1(%arg0: i32) -> (i32, i32) {
    %c0_i32 = arith.constant 0 : i32
    %c0_i32_0 = arith.constant 0 : i32
    return %arg0, %c0_i32 : i32, i32
  }
}

</mosaic_0001>

<bundles_post_ra>
// kernel: tpu_custom_call.1
= control target key start
LH: loop header
LB: loop body
LE: loop exit
PB: predicated region body
PF: predicated region fallthrough
CT: control target
= control target key end

     0   :  { %6 = vsyncpa [#allocation3], 0  ;;  %s240_s6 = smov [#allocation2]   ;;  %s260_s0 = inlined_call_operand.hbm [shape: f32[8,4,32], index: 0, kind: input, shape index: {}]   ;;  %s261_s1 = inlined_call_operand.vmem [shape: f32[8,1], index: 1, kind: output, shape index: {}]  }
   0x1   :  { %s12_s7 = sshll.u32 %s240_s6, 4  ;;  %s13_s7 = int_to_ptr.vmem [resolvable:$true] %s12_s7 }
   0x2   :  { %s226_s8 = scalar_lea.vmem %s13_s7, 512  ;;  %p231_p1 = scmp.lt.s32.totalorder %s13_s7, %s13_s7 }
   0x3   :  { %p227_p0 = scmp.ne.s32.totalorder %s13_s7, %s226_s8  ;;  %p232_p2 = scmp.lt.s32.totalorder %s226_s8, %s226_s8 }
   0x5   :  { %p233_p3 = por %p232_p2, %p231_p1 }
   0x7   :  { %p234_p4 = pnand %p233_p3, %p227_p0 }
   0x9   :  { %237 = shalt.err (!%p234_p4)
}
   0xa   :  { %s241_s9 = smov 64   ;;  %s242_s10 = smov 4  }
   0xb   :  { %18 = dma.hbm_to_vmem [thread:$0]  %s260_s0, 512, %s13_s7, [#allocation3], %s241_s9, %s241_s9, %s242_s10  }
   0xc   :  { %238 = dma.done.wait [#allocation3], 512  }
   0xd   :  { %239 = vsyncadd [#allocation3], 4294966784  ;;  %v22_v0 = vld [vmem:[#allocation2] sm:$0x1]  ;;  %v23_v1 = vld [vmem:[#allocation2 + $0x4] sm:$0x1] }
   0xe   :  { %v24_v2 = vld [vmem:[#allocation2 + $0x8] sm:$0x1]  ;;  %v25_v3 = vld [vmem:[#allocation2 + $0xc] sm:$0x1]  ;;  %v26_v4 = vld [vmem:[#allocation2 + $0x10] sm:$0x1]  ;;  %v38_v6 = vmul.f32 %v22_v0, %v22_v0  ;;  %v39_v7 = vmul.f32 %v23_v1, %v23_v1 }
   0xf   :  { %v27_v5 = vld [vmem:[#allocation2 + $0x14] sm:$0x1]  ;;  %v28_v8 = vld [vmem:[#allocation2 + $0x18] sm:$0x1]  ;;  %v29_v9 = vld [vmem:[#allocation2 + $0x1c] sm:$0x1]  ;;  %v40_v10 = vmul.f32 %v24_v2, %v24_v2  ;;  %v41_v11 = vmul.f32 %v25_v3, %v25_v3  ;;  %v42_v12 = vmul.f32 %v26_v4, %v26_v4 }
  0x10   :  { %v43_v13 = vmul.f32 %v27_v5, %v27_v5  ;;  %v54_v14 = vld [vmem:[#allocation2 + $0x1] sm:$0x1]  ;;  %v44_v15 = vmul.f32 %v28_v8, %v28_v8  ;;  %v45_v16 = vmul.f32 %v29_v9, %v29_v9  ;;  %v55_v17 = vld [vmem:[#allocation2 + $0x5] sm:$0x1]  ;;  %v56_v18 = vld [vmem:[#allocation2 + $0x9] sm:$0x1] }
  0x11   :  { %v57_v19 = vld [vmem:[#allocation2 + $0xd] sm:$0x1]  ;;  %v62_v20 = vadd.f32 %v54_v14, %v22_v0  ;;  %v70_v21 = vmul.f32 %v54_v14, %v54_v14  ;;  %v58_v22 = vld [vmem:[#allocation2 + $0x11] sm:$0x1]  ;;  %v59_v23 = vld [vmem:[#allocation2 + $0x15] sm:$0x1]  ;;  %v63_v25 = vadd.f32 %v55_v17, %v23_v1  ;;  %v64_v26 = vadd.f32 %v56_v18, %v24_v2 }
  0x12   :  { %v60_v24 = vld [vmem:[#allocation2 + $0x19] sm:$0x1]  ;;  %v65_v27 = vadd.f32 %v57_v19, %v25_v3  ;;  %v71_v28 = vmul.f32 %v55_v17, %v55_v17  ;;  %v61_v29 = vld [vmem:[#allocation2 + $0x1d] sm:$0x1]  ;;  %v66_v30 = vadd.f32 %v58_v22, %v26_v4  ;;  %v67_v31 = vadd.f32 %v59_v23, %v27_v5  ;;  %v86_v38 = vld [vmem:[#allocation2 + $0x2] sm:$0x1] }
  0x13   :  { %v68_v32 = vadd.f32 %v60_v24, %v28_v8  ;;  %v72_v33 = vmul.f32 %v56_v18, %v56_v18  ;;  %v69_v34 = vadd.f32 %v61_v29, %v29_v9  ;;  %v73_v35 = vmul.f32 %v57_v19, %v57_v19  ;;  %v87_v39 = vld [vmem:[#allocation2 + $0x6] sm:$0x1]  ;;  %v88_v40 = vld [vmem:[#allocation2 + $0xa] sm:$0x1]  ;;  %v89_v45 = vld [vmem:[#allocation2 + $0xe] sm:$0x1] }
  0x14   :  { %v74_v36 = vmul.f32 %v58_v22, %v58_v22  ;;  %v75_v37 = vmul.f32 %v59_v23, %v59_v23  ;;  %v76_v41 = vmul.f32 %v60_v24, %v60_v24  ;;  %v77_v42 = vmul.f32 %v61_v29, %v61_v29  ;;  %v90_v46 = vld [vmem:[#allocation2 + $0x12] sm:$0x1]  ;;  %v91_v47 = vld [vmem:[#allocation2 + $0x16] sm:$0x1]  ;;  %v92_v52 = vld [vmem:[#allocation2 + $0x1a] sm:$0x1] }
  0x15   :  { %v78_v43 = vadd.f32 %v70_v21, %v38_v6  ;;  %v79_v44 = vadd.f32 %v71_v28, %v39_v7  ;;  %v80_v48 = vadd.f32 %v72_v33, %v40_v10  ;;  %v81_v49 = vadd.f32 %v73_v35, %v41_v11  ;;  %v93_v53 = vld [vmem:[#allocation2 + $0x1e] sm:$0x1]  ;;  %v118_v6 = vld [vmem:[#allocation2 + $0x3] sm:$0x1]  ;;  %v119_v7 = vld [vmem:[#allocation2 + $0x7] sm:$0x1] }
  0x16   :  { %v82_v50 = vadd.f32 %v74_v36, %v42_v12  ;;  %v83_v51 = vadd.f32 %v75_v37, %v43_v13  ;;  %v84_v54 = vadd.f32 %v76_v41, %v44_v15  ;;  %v85_v55 = vadd.f32 %v77_v42, %v45_v16  ;;  %v120_v8 = vld [vmem:[#allocation2 + $0xb] sm:$0x1]  ;;  %v121_v13 = vld [vmem:[#allocation2 + $0xf] sm:$0x1]  ;;  %v122_v14 = vld [vmem:[#allocation2 + $0x13] sm:$0x1] }
  0x17   :  { %v94_v56 = vadd.f32 %v86_v38, %v62_v20  ;;  %v95_v57 = vadd.f32 %v87_v39, %v63_v25  ;;  %v96_v58 = vadd.f32 %v88_v40, %v64_v26  ;;  %v97_v59 = vadd.f32 %v89_v45, %v65_v27  ;;  %v123_v15 = vld [vmem:[#allocation2 + $0x17] sm:$0x1]  ;;  %v124_v20 = vld [vmem:[#allocation2 + $0x1b] sm:$0x1]  ;;  %v125_v21 = vld [vmem:[#allocation2 + $0x1f] sm:$0x1] }
  0x18   :  { %v98_v60 = vadd.f32 %v90_v46, %v66_v30  ;;  %v99_v61 = vadd.f32 %v91_v47, %v67_v31  ;;  %v100_v62 = vadd.f32 %v92_v52, %v68_v32  ;;  %v101_v63 = vadd.f32 %v93_v53, %v69_v34 }
  0x19   :  { %v102_v0 = vmul.f32 %v86_v38, %v86_v38  ;;  %v103_v1 = vmul.f32 %v87_v39, %v87_v39  ;;  %v104_v2 = vmul.f32 %v88_v40, %v88_v40  ;;  %v105_v3 = vmul.f32 %v89_v45, %v89_v45 }
  0x1a   :  { %v106_v4 = vmul.f32 %v90_v46, %v90_v46  ;;  %v107_v5 = vmul.f32 %v91_v47, %v91_v47  ;;  %v108_v9 = vmul.f32 %v92_v52, %v92_v52  ;;  %v109_v10 = vmul.f32 %v93_v53, %v93_v53 }
  0x1b   :  { %v110_v11 = vadd.f32 %v102_v0, %v78_v43  ;;  %v111_v12 = vadd.f32 %v103_v1, %v79_v44  ;;  %v112_v16 = vadd.f32 %v104_v2, %v80_v48  ;;  %v113_v17 = vadd.f32 %v105_v3, %v81_v49 }
  0x1c   :  { %v114_v18 = vadd.f32 %v106_v4, %v82_v50  ;;  %v115_v19 = vadd.f32 %v107_v5, %v83_v51  ;;  %v116_v22 = vadd.f32 %v108_v9, %v84_v54  ;;  %v117_v23 = vadd.f32 %v109_v10, %v85_v55 }
  0x1d   :  { %v126_v24 = vadd.f32 %v118_v6, %v94_v56  ;;  %v127_v25 = vadd.f32 %v119_v7, %v95_v57  ;;  %v128_v26 = vadd.f32 %v120_v8, %v96_v58  ;;  %v129_v27 = vadd.f32 %v121_v13, %v97_v59 }
  0x1e   :  { %v130_v28 = vadd.f32 %v122_v14, %v98_v60  ;;  %v131_v29 = vadd.f32 %v123_v15, %v99_v61  ;;  %v132_v30 = vadd.f32 %v124_v20, %v100_v62  ;;  %v133_v31 = vadd.f32 %v125_v21, %v101_v63 }
  0x1f   :  { %v134_v32 = vmul.f32 %v118_v6, %v118_v6  ;;  %v135_v33 = vmul.f32 %v119_v7, %v119_v7  ;;  %v136_v34 = vmul.f32 %v120_v8, %v120_v8  ;;  %v137_v35 = vmul.f32 %v121_v13, %v121_v13 }
  0x20   :  { %v138_v36 = vmul.f32 %v122_v14, %v122_v14  ;;  %v139_v37 = vmul.f32 %v123_v15, %v123_v15  ;;  %vm183_vm0 = vcmask 1041409   ;;  %v140_v38 = vmul.f32 %v124_v20, %v124_v20 }
  0x21   :  { %v141_v39 = vmul.f32 %v125_v21, %v125_v21  ;;  %v142_v40 = vadd.f32 %v134_v32, %v110_v11  ;;  %v143_v41 = vadd.f32 %v135_v33, %v111_v12  ;;  %v144_v42 = vadd.f32 %v136_v34, %v112_v16 }
  0x22   :  { %v145_v43 = vadd.f32 %v137_v35, %v113_v17  ;;  %v146_v44 = vadd.f32 %v138_v36, %v114_v18  ;;  %v147_v45 = vadd.f32 %v139_v37, %v115_v19  ;;  %v148_v46 = vadd.f32 %v140_v38, %v116_v22 }
  0x23   :  { %v149_v47 = vadd.f32 %v141_v39, %v117_v23  ;;  %v150_v48 = vmul.f32 %v126_v24, %v126_v24  ;;  %v151_v49 = vmul.f32 %v127_v25, %v127_v25  ;;  %v152_v50 = vmul.f32 %v128_v26, %v128_v26 }
  0x24   :  { %v153_v51 = vmul.f32 %v129_v27, %v129_v27  ;;  %v154_v52 = vmul.f32 %v130_v28, %v130_v28  ;;  %v155_v53 = vmul.f32 %v131_v29, %v131_v29  ;;  %v156_v54 = vmul.f32 %v132_v30, %v132_v30 }
  0x25   :  { %v157_v55 = vmul.f32 %v133_v31, %v133_v31  ;;  %v158_v56 = vsub.f32 %v150_v48, %v142_v40  ;;  %v159_v57 = vsub.f32 %v151_v49, %v143_v41  ;;  %v160_v58 = vsub.f32 %v152_v50, %v144_v42 }
  0x26   :  { %v161_v59 = vsub.f32 %v153_v51, %v145_v43  ;;  %v162_v60 = vsub.f32 %v154_v52, %v146_v44  ;;  %v163_v61 = vsub.f32 %v155_v53, %v147_v45  ;;  %v164_v62 = vsub.f32 %v156_v54, %v148_v46 }
  0x27   :  { %v165_v63 = vsub.f32 %v157_v55, %v149_v47  ;;  %v166_v0 = vmul.f32 0.5, %v158_v56  ;;  %v167_v1 = vmul.f32 0.5, %v159_v57  ;;  %v168_v2 = vmul.f32 0.5, %v160_v58 }
  0x28   :  { %v169_v3 = vmul.f32 0.5, %v161_v59  ;;  %v170_v4 = vmul.f32 0.5, %v162_v60  ;;  %v171_v5 = vmul.f32 0.5, %v163_v61  ;;  %v172_v6 = vmul.f32 0.5, %v164_v62 }
  0x29   :  { %v173_v7 = vmul.f32 0.5, %v165_v63  ;;  %v182_v8 = vrot.slane %v167_v1, 7  ;;  %vm186_vm1 = vcmask 1042434   ;;  %v185_v9 = vrot.slane %v168_v2, 6 }
  0x2a   :  { %v188_v10 = vrot.slane %v169_v3, 5  ;;  %vm189_vm2 = vcmask 1043459   ;;  %v191_v11 = vrot.slane %v170_v4, 4  ;;  %vm192_vm3 = vcmask 1044484  }
  0x2b   :  { %v184_v12 = vsel %vm183_vm0, %v182_v8, %v166_v0  ;;  %v194_v13 = vrot.slane %v171_v5, 3  ;;  %vm195_vm4 = vcmask 1045509   ;;  %v197_v15 = vrot.slane %v172_v6, 2 }
  0x2c   :  { %v187_v14 = vsel %vm186_vm1, %v185_v9, %v184_v12  ;;  %vm198_vm5 = vcmask 1046534   ;;  %v200_v17 = vrot.slane %v173_v7, 1  ;;  %vm201_vm6 = vcmask 1047559  }
  0x2d   :  { %v190_v16 = vsel %vm189_vm2, %v188_v10, %v187_v14  ;;  %vm204_vm7 = vcmask 261120   ;;  %vm208_vm8 = vcmask 7168  }
  0x2e   :  { %v193_v18 = vsel %vm192_vm3, %v191_v11, %v190_v16 }
  0x2f   :  { %v196_v19 = vsel %vm195_vm4, %v194_v13, %v193_v18 }
  0x30   :  { %v199_v20 = vsel %vm198_vm5, %v197_v15, %v196_v19 }
  0x31   :  { %v202_v21 = vsel %vm201_vm6, %v200_v17, %v199_v20 }
  0x32   :  { %v205_v22 = vsel %vm204_vm7, %v202_v21, 0.0 }
  0x33   :  { %206 = vadd.xlane.f32.xlu0 %v205_v22 }
  0xbc   :  { %v207_v23 = vpop.xlane.xlu0 %206 }
  0xbd   :  { %209 = vst.msk [vmem:[%s261_s1] sm:$0xff] %vm208_vm8, %v207_v23 }
  0xbe   :  { %214 = vsyncpa [#allocation3], 1 }

</bundles_post_ra>
